<compile_context>
chip_gen: v7x
topology: tpu7x:2x2x1
jax: 0.10.0
libtpu: 0.0.40
codegen_flags: <defaults>
</compile_context>

<pallas_src>
import math

import jax
import jax.numpy as jnp
from jax.experimental import pallas as pl
from jax.experimental.pallas import tpu as pltpu


# ---------------------------------------------------------------------------
# Kernels (pure elementwise; lane-dense 2D tiles)
# ---------------------------------------------------------------------------

def _add_pe_kernel(x_ref, pe_ref, o_ref):
    # Eval path: out = x + pe.  pe block is (1, tc) and broadcasts over rows.
    o_ref[...] = x_ref[...] + pe_ref[...]


def _add_pe_scale_kernel(x_ref, pe_ref, s_ref, o_ref):
    # Training path: out = (x + pe) * scale, scale in {0, 1/(1-p)}.
    o_ref[...] = (x_ref[...] + pe_ref[...]) * s_ref[...]


# ---------------------------------------------------------------------------
# Tiling / VMEM budgeting
# ---------------------------------------------------------------------------

def _vmem_budget():
    """(vmem_limit_bytes, per-x-block byte cap) chosen per TPU generation."""
    cap = None
    try:
        cap = pltpu.get_tpu_info().vmem_capacity_bytes
    except Exception:
        cap = None
    if cap is not None and cap >= 100 * (1 << 20):      # v5e / v6e: 128 MiB
        return 96 * (1 << 20), 10 * (1 << 20)
    if cap is not None and cap >= 48 * (1 << 20):       # v7x: 64 MiB per TC
        return 48 * (1 << 20), 6 * (1 << 20)
    return 32 * (1 << 20), 4 * (1 << 20)                # unknown: conservative


def _choose_tiles(num_rows: int, num_cols: int, itemsize: int, target_bytes: int):
    """Lane-dense (rows, cols) block that never exceeds target_bytes.

    rows: multiple of 8 (or full extent); cols: multiple of 128 (or full
    extent).  Ragged last tiles are handled by Pallas edge clipping.
    """
    # Rows first: full height when tiny, else 8 (grown later if budget allows).
    tr = num_rows if num_rows <= 8 else 8

    # Columns from the remaining byte budget.
    col_budget = max(128, (target_bytes // (tr * itemsize) // 128) * 128)
    tc = num_cols if num_cols <= col_budget else col_budget

    # Grow rows if there is leftover budget (block stays <= target_bytes).
    if num_rows > tr:
        rows_budget = max(tr, (target_bytes // (tc * itemsize) // 8) * 8)
        tr = num_rows if rows_budget >= num_rows else rows_budget
    return tr, tc


# ---------------------------------------------------------------------------
# PE buffer (identical to the PyTorch __init__)
# ---------------------------------------------------------------------------

def make_positional_encoding(sequence_length: int, embedding_dim: int,
                             dtype=jnp.float32) -> jnp.ndarray:
    positions = jnp.arange(sequence_length, dtype=jnp.float32)[:, None]
    scaling = jnp.exp(
        jnp.arange(0, embedding_dim, 2, dtype=jnp.float32)
        * (-math.log(10000.0) / embedding_dim)
    )
    pe = jnp.zeros((1, sequence_length, embedding_dim), dtype=jnp.float32)
    pe = pe.at[0, :, 0::2].set(jnp.sin(positions * scaling))
    pe = pe.at[0, :, 1::2].set(jnp.cos(positions * scaling))
    return pe.astype(dtype)


# ---------------------------------------------------------------------------
# Wrapper
# ---------------------------------------------------------------------------

def temporal_position_encoder(
    x: jnp.ndarray,
    pe: jnp.ndarray,
    *,
    dropout_rate: float = 0.1,
    training: bool = False,
    rng_key=None,
) -> jnp.ndarray:
    """out = dropout(x + pe); dropout only applied when training=True."""
    B, S, D = x.shape
    assert pe.shape == (1, S, D)
    N = S * D
    itemsize = x.dtype.itemsize

    use_dropout = training and dropout_rate > 0.0
    if use_dropout and dropout_rate >= 1.0:
        # Degenerate case: everything dropped (matches torch semantics).
        return jnp.zeros((B, S, D), dtype=x.dtype)

    # Lane-dense 2D views: the whole (S, D) slab becomes the lane axis so the
    # output stores are wide, unmasked vst's even when D < 128.
    x2 = x.reshape(B, N)
    pe2 = pe.astype(x.dtype).reshape(1, N)

    # --- per-generation VMEM budget -------------------------------------
    vmem_limit, block_cap = _vmem_budget()
    # Double-buffered: x in + out (+ scale in training) at (tr, tc), plus pe
    # padded to 8 sublanes -> ~6 (eval) or ~8 (train) blocks live per step.
    n_buffers = 8 if use_dropout else 6
    block_target = max(64 * 1024, min(block_cap, (vmem_limit - (4 << 20)) // n_buffers))

    tr, tc = _choose_tiles(B, N, itemsize, block_target)

    # --- grid (pe-tile index on outer axis => pe stays VMEM-resident) ----
    grid_cols = pl.cdiv(N, tc)
    grid_rows = pl.cdiv(B, tr)
    # v7x has 2 TensorCores: avoid a 1-step grid for large tensors so both
    # cores get work (harmless on single-TC v5e/v6e).
    if grid_cols * grid_rows == 1 and B * N * itemsize >= (2 << 20):
        if tc >= 256:
            tc = (tc // 2 // 128) * 128
        elif tr >= 16:
            tr = (tr // 2 // 8) * 8
        grid_cols = pl.cdiv(N, tc)
        grid_rows = pl.cdiv(B, tr)
    grid = (grid_cols, grid_rows)

    compiler_params = pltpu.CompilerParams(
        dimension_semantics=("parallel", "parallel"),
        vmem_limit_bytes=vmem_limit,
    )
    out_shape = jax.ShapeDtypeStruct((B, N), x.dtype)

    x_spec = pl.BlockSpec((tr, tc), lambda c, r: (r, c))
    pe_spec = pl.BlockSpec((1, tc), lambda c, r: (0, c))
    out_spec = pl.BlockSpec((tr, tc), lambda c, r: (r, c))

    if not use_dropout:
        cost = pl.CostEstimate(
            flops=B * N,
            transcendentals=0,
            bytes_accessed=(2 * B * N + N) * itemsize,
        )
        out2 = pl.pallas_call(
            _add_pe_kernel,
            out_shape=out_shape,
            grid_spec=pltpu.PrefetchScalarGridSpec(
                num_scalar_prefetch=0,
                grid=grid,
                in_specs=[x_spec, pe_spec],
                out_specs=out_spec,
            ),
            compiler_params=compiler_params,
            cost_estimate=cost,
        )(x2, pe2)
    else:
        if rng_key is None:
            rng_key = jax.random.PRNGKey(0)
        inv_keep = 1.0 / (1.0 - dropout_rate)
        # Pre-scaled dropout multiplier generated with standard JAX RNG
        # (portable; distributionally equivalent to torch, not bit-identical).
        keep = jax.random.bernoulli(rng_key, 1.0 - dropout_rate, (B, N))
        scale = jnp.where(keep, jnp.asarray(inv_keep, x.dtype),
                          jnp.asarray(0.0, x.dtype)).astype(x.dtype)
        cost = pl.CostEstimate(
            flops=2 * B * N,
            transcendentals=0,
            bytes_accessed=(3 * B * N + N) * itemsize,
        )
        out2 = pl.pallas_call(
            _add_pe_scale_kernel,
            out_shape=out_shape,
            grid_spec=pltpu.PrefetchScalarGridSpec(
                num_scalar_prefetch=0,
                grid=grid,
                in_specs=[x_spec, pe_spec, x_spec],   # scale tiled like x
                out_specs=out_spec,
            ),
            compiler_params=compiler_params,
            cost_estimate=cost,
        )(x2, pe2, scale)

    return out2.reshape(B, S, D)


# ---------------------------------------------------------------------------
# Demo / self-check
# ---------------------------------------------------------------------------

if __name__ == "__main__":
    # Shapes implied by the module: (batch, seq_len, embedding_dim)
    B, S, D = 2, 8, 32
    dropout_rate = 0.1

    key = jax.random.PRNGKey(0)
    k_x, k_drop = jax.random.split(key)
    x = jax.random.normal(k_x, (B, S, D), dtype=jnp.float32)
    pe = make_positional_encoding(sequence_length=S, embedding_dim=D, dtype=x.dtype)

    ref = x + pe  # broadcast over batch, same as PyTorch pe[:B]

    # Eval mode (dropout is identity) -- deterministic, checked vs pure JAX.
    out_eval = temporal_position_encoder(
        x, pe, dropout_rate=dropout_rate, training=False
    )
    jax.block_until_ready(out_eval)
    assert out_eval.shape == (B, S, D)
    assert jnp.allclose(out_eval, ref, atol=1e-6), "eval-mode mismatch"

    # Training mode -- inverted dropout: surviving elements equal ref/(1-p),
    # dropped ones are zero.
    out_train = temporal_position_encoder(
        x, pe, dropout_rate=dropout_rate, training=True, rng_key=k_drop
    )
    jax.block_until_ready(out_train)
    assert out_train.shape == (B, S, D)
    inv_keep = 1.0 / (1.0 - dropout_rate)
    ok = jnp.where(
        out_train != 0.0, jnp.abs(out_train - ref * inv_keep) < 1e-4, True
    )
    assert bool(ok.all()), "training-mode surviving-element mismatch"

    print("KERNEL_OK")
</pallas_src>

<mosaic_0001>
module attributes {stable_mosaic.version = 11 : i64} {
  func.func @_add_pe_kernel(%arg0: i32, %arg1: i32, %arg2: memref<2x256xf32, #tpu.memory_space<vmem>>, %arg3: memref<1x256xf32, #tpu.memory_space<vmem>>, %arg4: memref<2x256xf32, #tpu.memory_space<vmem>>) attributes {dimension_semantics = [#tpu.dimension_semantics<parallel>, #tpu.dimension_semantics<parallel>], iteration_bounds = array<i64: 1, 1>, scalar_prefetch = 0 : i64, scratch_operands = 0 : i64, tpu.core_type = #tpu.core_type<tc>, window_params = [{transform_indices = @transform_0, window_bounds = array<i64: 2, 256>}, {transform_indices = @transform_1, window_bounds = array<i64: 1, 256>}, {transform_indices = @transform_2, window_bounds = array<i64: 2, 256>}]} {
    %c0 = arith.constant 0 : index
    %c0_0 = arith.constant 0 : index
    %0 = vector.load %arg2[%c0, %c0_0] : memref<2x256xf32, #tpu.memory_space<vmem>>, vector<2x256xf32>
    %c0_1 = arith.constant 0 : index
    %c0_2 = arith.constant 0 : index
    %1 = vector.load %arg3[%c0_1, %c0_2] : memref<1x256xf32, #tpu.memory_space<vmem>>, vector<1x256xf32>
    %2 = vector.broadcast %1 : vector<1x256xf32> to vector<2x256xf32>
    %3 = arith.addf %0, %2 : vector<2x256xf32>
    %c0_3 = arith.constant 0 : index
    %c0_4 = arith.constant 0 : index
    %4 = vector.load %arg4[%c0_3, %c0_4] : memref<2x256xf32, #tpu.memory_space<vmem>>, vector<2x256xf32>
    tpu.vector_store %arg4[%c0_3, %c0_4], %3 {strides = array<i32>} : memref<2x256xf32, #tpu.memory_space<vmem>>, vector<2x256xf32>,
    return
  }
  func.func @transform_0(%arg0: i32, %arg1: i32) -> (i32, i32) {
    %c0_i32 = arith.constant 0 : i32
    return %arg1, %arg0 : i32, i32
  }
  func.func @transform_1(%arg0: i32, %arg1: i32) -> (i32, i32) {
    %c0_i32 = arith.constant 0 : i32
    %c0_i32_0 = arith.constant 0 : i32
    return %c0_i32, %arg0 : i32, i32
  }
  func.func @transform_2(%arg0: i32, %arg1: i32) -> (i32, i32) {
    %c0_i32 = arith.constant 0 : i32
    return %arg1, %arg0 : i32, i32
  }
}

</mosaic_0001>

<bundles_post_ra>
// kernel: tpu_custom_call.1
= control target key start
LH: loop header
LB: loop body
LE: loop exit
PB: predicated region body
PF: predicated region fallthrough
CT: control target
= control target key end

     0   :  { %7 = vsyncpa [#allocation3], 0  ;;  %s157_s0 = inlined_call_operand.hbm [shape: f32[2,256], index: 0, kind: input, shape index: {}]   ;;  %s158_s1 = inlined_call_operand.vmem [shape: f32[1,256], index: 1, kind: input, shape index: {}]   ;;  %s159_s2 = inlined_call_operand.hbm [shape: f32[2,256], index: 2, kind: output, shape index: {}]  }
   0x1   :  { %8 = vsyncpa [#allocation4], 0  ;;  %s112_s9 = smov [#allocation2]   ;;  %s64_s13 = scalar_lea.hbm %s157_s0, 64 }
   0x2   :  { %s15_s10 = sshll.u32 %s112_s9, 4  ;;  %p65_p0 = scmp.ne.s32.totalorder %s157_s0, %s64_s13  ;;  %s16_s10 = int_to_ptr.vmem [resolvable:$true] %s15_s10 }
   0x3   :  { %p68_p1 = scmp.lt.u32.totalorder %s64_s13, %s157_s0 }
   0x5   :  { %p70_p2 = pnand %p68_p1, %p65_p0 }
   0x7   :  { %73 = shalt.err (!%p70_p2)
}
   0x8   :  { %s74_s18 = scalar_lea.vmem %s16_s10, 64  ;;  %p79_p4 = scmp.lt.s32.totalorder %s16_s10, %s16_s10 }
   0x9   :  { %p75_p3 = scmp.ne.s32.totalorder %s16_s10, %s74_s18  ;;  %p80_p5 = scmp.lt.s32.totalorder %s74_s18, %s74_s18 }
   0xb   :  { %p81_p6 = por %p80_p5, %p79_p4 }
   0xd   :  { %p82_p7 = pnand %p81_p6, %p75_p3 }
   0xf   :  { %85 = shalt.err (!%p82_p7)
}
  0x10   :  { %18 = dma.hbm_to_vmem [thread:$0]  %s157_s0, 64, %s16_s10, [#allocation3]  }
  0x11   :  { %108 = dma.done.wait [#allocation3], 64  }
  0x12   :  { %109 = vsyncadd [#allocation3], 4294967232  ;;  %v27_v0 = vlaneseq  ;;  %v113_v1 = vmov 1983009808   ;;  %v25_v7 = vld [vmem:[%s158_s1] sm:$0x3] }
  0x13   :  { %v37_v2 = vunpack.c.l.s4 %v113_v1  ;;  %v24_v12 = vld [vmem:[#allocation2] sm:$0xf]  ;;  %s114_s23 = smov [#allocation5]  }
  0x14   :  { %v28_v3 = vshrl.u32 %v27_v0, 7  ;;  %s52_s0 = sshll.u32 %s114_s23, 4  ;;  %s53_s0 = int_to_ptr.vmem [resolvable:$true] %s52_s0 }
  0x15   :  { %v38_v6 = vunpack.c.0.s8 %v37_v2  ;;  %s86_s24 = scalar_lea.vmem %s53_s0, 64  ;;  %p91_p9 = scmp.lt.s32.totalorder %s53_s0, %s53_s0 }
  0x16   :  { %v29_v4 = vsub.s32 0, %v28_v3  ;;  %v33_v5 = vsub.s32 1, %v28_v3  ;;  %p87_p8 = scmp.ne.s32.totalorder %s53_s0, %s86_s24  ;;  %p92_p10 = scmp.lt.s32.totalorder %s86_s24, %s86_s24 }
  0x17   :  { %v41_v10 = vsub.s32 %v38_v6, %v28_v3 }
  0x18   :  { %v30_v8 = vrot.slane %v25_v7, %v29_v4  ;;  %v34_v9 = vrot.slane %v25_v7, %v33_v5  ;;  %p93_p11 = por %p92_p10, %p91_p9 }
  0x1a   :  { %v35_v11 = vcombine.low %v30_v8, %v34_v9  ;;  %p94_p12 = pnand %p93_p11, %p87_p8 }
  0x1c   :  { %v42_v13 = vrot.slane %v35_v11, %v41_v10 }
  0x1e   :  { %v44_v14 = vadd.f32 %v42_v13, %v24_v12 }
  0x20   :  { %45 = vst [vmem:[#allocation5] sm:$0xf] %v44_v14 }
  0x21   :  { %97 = shalt.err (!%p94_p12)
}
  0x22   :  { %s98_s26 = scalar_lea.hbm %s159_s2, 64 }
  0x23   :  { %p99_p13 = scmp.ne.s32.totalorder %s159_s2, %s98_s26  ;;  %p102_p0 = scmp.lt.u32.totalorder %s98_s26, %s159_s2 }
  0x25   :  { %p104_p1 = pnand %p102_p0, %p99_p13 }
  0x27   :  { %107 = shalt.err (!%p104_p1)
}
  0x28   :  { %55 = dma.vmem_to_hbm [thread:$0]  %s53_s0, 64, %s159_s2, [#allocation4]  }
  0x29   :  { %110 = dma.done.wait [#allocation4], 64  }
  0x2a   :  { %111 = vsyncadd [#allocation4], 4294967232 }
  0x2b   :  { %59 = vsyncpa [#allocation3], 1 }
  0x2c   :  { %60 = vsyncpa [#allocation4], 1 }

</bundles_post_ra>
